<compile_context>
chip_gen: v7x
topology: tpu7x:2x2x1
jax: 0.10.0
libtpu: 0.0.40
codegen_flags: <defaults>
</compile_context>

<pallas_src>
import jax
import jax.numpy as jnp
import numpy as np
from jax.experimental import pallas as pl
from jax.experimental.pallas import tpu as pltpu

# ogb.utils.features.get_bond_feature_dims()
FULL_BOND_FEATURE_DIMS = [5, 6, 2]


def _round_up(x, m):
    return ((x + m - 1) // m) * m


# ----------------------------- kernel -------------------------------------- #
def bond_encoder_kernel(idx_ref, table_ref, out_ref):
    """idx_ref:   (tm, F)    int32    — indices already offset into the
                                        concatenated table.
    table_ref: (t_pad, E)  f32/bf16 — concatenated, zero-row-padded tables
                                      (constant index_map -> VMEM-resident).
    out_ref:   (tm, E)     f32/bf16 — summed embeddings.
    """
    idx = idx_ref[...]                                          # (tm, F) int32
    tm = idx.shape[0]
    t_pad = table_ref.shape[0]
    col = jax.lax.broadcasted_iota(jnp.int32, (tm, t_pad), 1)   # lane iota
    # Multi-hot with exactly F ones per (valid) row.  F == 3 is tiny, so three
    # integer compares are cheaper than a selector matmul and stay exact for
    # any vocabulary size.
    hot = idx[:, 0:1] == col
    for i in range(1, idx.shape[1]):
        hot = hot | (idx[:, i:i + 1] == col)
    multi_hot = hot.astype(table_ref.dtype)                     # (tm, t_pad)
    # Single MXU matmul: gather + sum of the F embedding rows, f32 accumulate.
    acc = jnp.dot(multi_hot, table_ref[...],
                  preferred_element_type=jnp.float32)           # (tm, E)
    out_ref[...] = acc.astype(out_ref.dtype)


# ----------------------------- wrapper -------------------------------------- #
def make_bond_encoder_params(emb_dim, key):
    """Xavier-uniform init of each per-feature embedding table (deterministic)."""
    tables = []
    for i, dim in enumerate(FULL_BOND_FEATURE_DIMS):
        k = jax.random.fold_in(key, i)
        bound = float(np.sqrt(6.0 / (dim + emb_dim)))
        tables.append(jax.random.uniform(k, (dim, emb_dim), jnp.float32,
                                         minval=-bound, maxval=bound))
    return tables


def pack_bond_tables(tables, table_dtype=jnp.float32):
    """Hoistable per-parameter-set preprocessing (call once, reuse per batch):
    concatenate the per-feature tables, zero-pad the row count to a sublane
    multiple, and return (packed_table [t_pad, E], per-feature offsets [F])."""
    dims = [int(t.shape[0]) for t in tables]
    t_total = sum(dims)
    t_pad = _round_up(t_total, 8)
    big = jnp.concatenate([t.astype(table_dtype) for t in tables], axis=0)
    big = jnp.pad(big, ((0, t_pad - t_total), (0, 0)))
    offsets = jnp.asarray(np.cumsum([0] + dims[:-1]), dtype=jnp.int32)
    return big, offsets


def _pick_tile_m(n, emb_dim, out_bytes):
    n_r = _round_up(max(n, 1), 8)
    # Keep the double-buffered output tile under ~8 MiB so the whole pipeline
    # fits v5e's 16 MiB scoped-VMEM default with headroom (32 MiB on v6e/v7x).
    budget_rows = max(64, (8 * 1024 * 1024) // max(1, emb_dim * out_bytes * 2))
    cap = min(2048, (budget_rows // 8) * 8)
    # Give the grid >= 2 tiles whenever there is enough work so the "parallel"
    # row axis actually shards across v7x's two TensorCores.
    two_tiles = _round_up(pl.cdiv(n_r, 2), 8)
    return max(8, min(cap, two_tiles, n_r))


def bond_encoder_forward(edge_attr, tables=None, *, packed=None,
                         table_dtype=jnp.float32, out_dtype=jnp.float32,
                         tile_m=None):
    """OGB BondEncoder forward: sum_i Embedding_i(edge_attr[:, i]).

    edge_attr: [N, F] integer bond features.  Returns [N, E] in `out_dtype`
    (f32 default for PyTorch parity; bf16 opt-in halves the dominant HBM
    writeback stream).  Pass `packed=pack_bond_tables(tables, ...)` to hoist
    table packing out of the per-batch path.
    """
    if packed is None:
        assert tables is not None
        packed = pack_bond_tables(tables, table_dtype)
    big_table, offsets = packed
    n, f = edge_attr.shape
    assert f == offsets.shape[0]
    t_pad, emb_dim = big_table.shape

    # TODO(synk): out-of-range categorical values are not bounds-checked
    # (torch.nn.Embedding would raise); they silently map into a neighbouring
    # feature's rows or the zero-padded tail.
    idx = edge_attr.astype(jnp.int32) + offsets[None, :]            # (N, F)

    out_bytes = np.dtype(out_dtype).itemsize
    if tile_m is None:
        tile_m = _pick_tile_m(n, emb_dim, out_bytes)
    else:
        tile_m = _round_up(tile_m, 8)

    grid = (pl.cdiv(n, tile_m),)   # boundary block masked by Pallas:
                                   # no row padding, no trailing slice.
    return pl.pallas_call(
        bond_encoder_kernel,
        out_shape=jax.ShapeDtypeStruct((n, emb_dim), out_dtype),
        grid_spec=pltpu.PrefetchScalarGridSpec(
            num_scalar_prefetch=0,
            grid=grid,
            in_specs=[
                pl.BlockSpec((tile_m, f), lambda i: (i, 0)),
                pl.BlockSpec((t_pad, emb_dim), lambda i: (0, 0)),  # VMEM-resident
            ],
            out_specs=pl.BlockSpec((tile_m, emb_dim), lambda i: (i, 0)),
        ),
        compiler_params=pltpu.CompilerParams(
            dimension_semantics=("parallel",)),
    )(idx, big_table)


def bond_encoder_ref(edge_attr, tables):
    """Pure-JAX reference (gather + sum), f32 throughout."""
    out = 0
    for i, t in enumerate(tables):
        out = out + t[edge_attr[:, i]]
    return out


if __name__ == "__main__":
    key = jax.random.PRNGKey(0)
    emb_dim = 32
    num_edges = 10  # small "molecule"

    tables = make_bond_encoder_params(emb_dim, key)
    packed = pack_bond_tables(tables, table_dtype=jnp.float32)   # hoisted once

    # deterministic categorical features: edge_attr[:, i] in [0, dim_i)
    kx = jax.random.fold_in(key, 1234)
    cols = []
    for i, dim in enumerate(FULL_BOND_FEATURE_DIMS):
        cols.append(jax.random.randint(jax.random.fold_in(kx, i),
                                       (num_edges, 1), 0, dim, dtype=jnp.int32))
    edge_attr = jnp.concatenate(cols, axis=1)  # [N, F] int32

    out = bond_encoder_forward(edge_attr, packed=packed)
    out = jax.block_until_ready(out)

    ref = bond_encoder_ref(edge_attr, tables)
    np.testing.assert_allclose(np.asarray(out), np.asarray(ref),
                               rtol=1e-5, atol=1e-5)
    assert out.shape == (num_edges, emb_dim) and out.dtype == jnp.float32
    print("KERNEL_OK")
</pallas_src>

<mosaic_0001>
module attributes {stable_mosaic.version = 11 : i64} {
  func.func @bond_encoder_kernel(%arg0: i32, %arg1: memref<8x3xi32, #tpu.memory_space<vmem>>, %arg2: memref<16x32xf32, #tpu.memory_space<vmem>>, %arg3: memref<8x32xf32, #tpu.memory_space<vmem>>) attributes {dimension_semantics = [#tpu.dimension_semantics<parallel>], iteration_bounds = array<i64: 2>, scalar_prefetch = 0 : i64, scratch_operands = 0 : i64, tpu.core_type = #tpu.core_type<tc>, window_params = [{transform_indices = @transform_0, window_bounds = array<i64: 8, 3>}, {pipeline_mode = #tpu.pipeline_mode<synchronous>, transform_indices = @transform_1, window_bounds = array<i64: 16, 32>}, {transform_indices = @transform_2, window_bounds = array<i64: 8, 32>}]} {
    %c0 = arith.constant 0 : index
    %c0_0 = arith.constant 0 : index
    %0 = vector.load %arg1[%c0, %c0_0] : memref<8x3xi32, #tpu.memory_space<vmem>>, vector<8x3xi32>
    %1 = tpu.iota {dimensions = array<i32: 1>} : vector<8x16xi32>
    %2 = vector.extract_strided_slice %0 {offsets = [0, 0], sizes = [8, 1], strides = [1, 1]} : vector<8x3xi32> to vector<8x1xi32>
    %3 = vector.broadcast %2 : vector<8x1xi32> to vector<8x16xi32>
    %4 = arith.cmpi eq, %3, %1 : vector<8x16xi32>
    %5 = vector.extract_strided_slice %0 {offsets = [0, 1], sizes = [8, 1], strides = [1, 1]} : vector<8x3xi32> to vector<8x1xi32>
    %6 = vector.broadcast %5 : vector<8x1xi32> to vector<8x16xi32>
    %7 = arith.cmpi eq, %6, %1 : vector<8x16xi32>
    %8 = arith.ori %4, %7 : vector<8x16xi1>
    %9 = vector.extract_strided_slice %0 {offsets = [0, 2], sizes = [8, 1], strides = [1, 1]} : vector<8x3xi32> to vector<8x1xi32>
    %10 = vector.broadcast %9 : vector<8x1xi32> to vector<8x16xi32>
    %11 = arith.cmpi eq, %10, %1 : vector<8x16xi32>
    %12 = arith.ori %8, %11 : vector<8x16xi1>
    %13 = arith.extui %12 : vector<8x16xi1> to vector<8x16xi32>
    %14 = arith.sitofp %13 : vector<8x16xi32> to vector<8x16xf32>
    %c0_1 = arith.constant 0 : index
    %c0_2 = arith.constant 0 : index
    %15 = vector.load %arg2[%c0_1, %c0_2] : memref<16x32xf32, #tpu.memory_space<vmem>>, vector<16x32xf32>
    %cst = arith.constant dense<0.000000e+00> : vector<8x32xf32>
    %16 = tpu.matmul %14, %15, %cst {dimension_numbers = #tpu.dot_dimension_numbers<[1], [0], [0], [1], [0, 0, 1, 1], [], []>} : vector<8x16xf32>, vector<16x32xf32>, vector<8x32xf32> -> vector<8x32xf32>
    %c0_3 = arith.constant 0 : index
    %c0_4 = arith.constant 0 : index
    %17 = vector.load %arg3[%c0_3, %c0_4] : memref<8x32xf32, #tpu.memory_space<vmem>>, vector<8x32xf32>
    tpu.vector_store %arg3[%c0_3, %c0_4], %16 {strides = array<i32>} : memref<8x32xf32, #tpu.memory_space<vmem>>, vector<8x32xf32>,
    return
  }
  func.func @transform_0(%arg0: i32) -> (i32, i32) {
    %c0_i32 = arith.constant 0 : i32
    %c0_i32_0 = arith.constant 0 : i32
    return %arg0, %c0_i32 : i32, i32
  }
  func.func @transform_1(%arg0: i32) -> (i32, i32) {
    %c0_i32 = arith.constant 0 : i32
    %c0_i32_0 = arith.constant 0 : i32
    %c0_i32_1 = arith.constant 0 : i32
    return %c0_i32, %c0_i32_0 : i32, i32
  }
  func.func @transform_2(%arg0: i32) -> (i32, i32) {
    %c0_i32 = arith.constant 0 : i32
    %c0_i32_0 = arith.constant 0 : i32
    return %arg0, %c0_i32 : i32, i32
  }
}

</mosaic_0001>

<bundles_post_ra>
// kernel: tpu_custom_call.1
= control target key start
LH: loop header
LB: loop body
LE: loop exit
PB: predicated region body
PF: predicated region fallthrough
CT: control target
= control target key end

     0   :  { %7 = vsyncpa [#allocation3], 0  ;;  %s575_s0 = inlined_call_operand.vmem [shape: s32[10,3], index: 0, kind: input, shape index: {}]   ;;  %s576_s1 = inlined_call_operand.vmem [shape: f32[16,32], index: 1, kind: input, shape index: {}]   ;;  %s577_s2 = inlined_call_operand.hbm [shape: f32[10,32], index: 2, kind: output, shape index: {}]  }
   0x1   :  { %9 = vsyncpa [#allocation3 + $0x1], 0  ;;  %s469_s9 = smov 0   ;;  %s471_s10 = smov 0  }
   0x2   :  { %s473_s11 = smov 0   ;;  %s475_s12 = smov 0  }
   0x3 LB: > { %s490_s13 = sadd.s32 4294967295, %s445_s12   ;;  %s309_s14 = sadd.s32 4294967294, %s445_s12   ;;  %s445_s12 = sphi %s475_s12, %s583_s12   ;;  %s441_s11 = sphi %s473_s11, %s582_s11   ;;  %s437_s10 = sphi %s471_s10, %s581_s10   ;;  %s433_s9 = sphi %s469_s9, %s580_s9  }
   0x4   : > { %s494_s15 = sadd.s32 1, %s445_s12   ;;  %s69_s16 = sadd.s32 1, %s441_s11 }
   0x5   : > { %s66_s17 = ssub.s32 %s445_s12, %s494_s15  ;;  %p79_p0 = scmp.ne.s32.totalorder %s441_s11, %s437_s10 }
   0x6   : > { %p67_p1 = scmp.eq.s32.totalorder %s66_s17, 0  ;;  %p80_p2 = scmp.eq.s32.totalorder %s490_s13, 1 }
   0x7   : > { %p85_p3 = scmp.ne.s32.totalorder %s437_s10, %s433_s9  ;;  %p86_p4 = scmp.eq.s32.totalorder %s309_s14, 1 }
   0x8   : > { %s505_s18 = scalar_select %p67_p1, %s441_s11, %s69_s16  }
   0x9   : > { %p507_p5 = por %p80_p2, %p79_p0  ;;  %p511_p6 = por %p86_p4, %p85_p3 }
   0xa   : > { %p312_p7 = scmp.ge.s32.totalorder %s445_s12, 1  ;;  %p114_p8 = scmp.lt.s32.totalorder %s445_s12, 3 }
   0xc   : > { %p115_p9 = pnand %p312_p7, %p114_p8 }
   0xd   : > { %p135_p10 = scmp.lt.s32.totalorder (!%p115_p9), %s490_s13, 1  ;;  %v447_v0 = vmov (!%p115_p9), 0   ;;  %v448_v1 = vmov (!%p115_p9), 2   ;;  %v158_v3 = vld [vmem:[%s576_s1] sm:$0xff] (!%p115_p9)  ;;  %v159_v4 = vld [vmem:[%s576_s1 + $0x8] sm:$0xff] (!%p115_p9)  ;;  %v449_v5 = vmov (!%p115_p9), 1   ;;  %v140_v9 = vlaneseq (!%p115_p9) }
   0xe   : > { %118 = sbr.rel (%p115_p9) target bundleno = 389 (0x185), region = 28  ;;  %379 = vset.pattern.permute.xlu0 (!%p115_p9), %v447_v0  ;;  %381 = vset.pattern.permute.xlu1 (!%p115_p9), %v448_v1  ;;  %v332_v6 = vpack.c.bf16 (!%p115_p9), %v159_v4, %v158_v3  ;;  %v450_v7 = vmov (!%p115_p9), 0.0|0.0   ;;  %vm451_vm0 = vmmov (!%p115_p9), 0   ;;  %v452_v8 = vmov (!%p115_p9), 0.0   ;;  %s132_s30 = sand.u32 (!%p115_p9), 1, %s437_s10  }
   0xf   : > { %331 = vmatprep.subr.bf16.mxu0 (!%p115_p9), %v450_v7  ;;  %328 = vmatprep.mubr.msk.f32.mxu0 (!%p115_p9), %vm451_vm0, %v452_v8  ;;  %v141_v11 = vand.u32 (!%p115_p9), 127, %v140_v9  ;;  %vm160_vm5 = vcmask (!%p115_p9), 130048   ;;  %s313_s3 = sshll.u32 (!%p115_p9), %s132_s30, 3  ;;  %s318_s4 = sshll.u32 (!%p115_p9), %s490_s13, 7  ;;  %vm234_vm7 = vcmask (!%p115_p9), 261120  }
  0x10   : > { %333 = vmatpush3.bf16.msra.mxu0 (!%p115_p9), %v332_v6  ;;  %s134_s5 = scalar_lea.vmem (!%p115_p9), [#allocation2], %s313_s3  ;;  %s533_s14 = scalar_lea.hbm (!%p115_p9), %s577_s2, %s318_s4 }
  0x11   : > { %s250_s6 = sshll.u32 (!%p115_p9), %s134_s5, 4  ;;  %s237_s16 = scalar_lea.sflag (!%p115_p9), [#allocation3], %s132_s30  ;;  %s535_s6 = int_to_ptr.vmem [resolvable:$true] %s250_s6 }
  0x12   : > { %s383_s17 = scalar_lea.vmem (!%p115_p9), %s535_s6, 128 }
  0x13   : > { %p384_p11 = scmp.ne.s32.totalorder (!%p115_p9), %s535_s6, %s383_s17 }
  0x15   : > { %s136_s21 = scalar_select %p135_p10, %s490_s13, 1 }
  0x16   : > { %p385_p12 = pnand %p384_p11, %p507_p5  ;;  %s453_s13 = smov [#allocation2]  }
  0x17   : > { %s314_s22 = sshll.u32 %s136_s21, 3  ;;  %s387_s21 = sshll.u32 %s453_s13, 4  ;;  %s388_s21 = int_to_ptr.vmem [resolvable:$false] %s387_s21 }
  0x18   : > { %s138_s25 = scalar_lea.vmem %s575_s0, %s314_s22  ;;  %p386_p13 = pneg %p385_p12 }
  0x19   : > { %v139_v2 = vld [vmem:[%s138_s25] sm:$0xff]  ;;  %s389_s22 = scalar_lea.vmem %s388_s21, 256  ;;  %p390_p0 = scmp.lt.s32.totalorder %s535_s6, %s388_s21 }
  0x1a   : > { %143 = vperm.xlu0 %379, %v139_v2   ;;  %152 = vperm.xlu1 %381, %v139_v2   ;;  %p391_p1 = scmp.lt.s32.totalorder %s389_s22, %s383_s17 }
  0x1c   : > { %p392_p2 = por %p391_p1, %p390_p0 }
  0x1e   : > { %380 = vset.pattern.permute.xlu0 %v449_v5  ;;  %p393_p3 = pnand %p392_p2, %p386_p13 }
  0x1f   : > { %147 = vperm.xlu0 %380, %v139_v2  }
  0x23   : > { %382 = vset.pattern.permute.xlu0 %v448_v1 }
  0x99   : > { %v144_v10 = vpop.permute.xlu0 %143  ;;  %v153_v12 = vpop.permute.xlu1 %152 }
  0x9a   : > { %vm154_vm1 = vcmp.eq.s32.totalorder %v153_v12, %v141_v11  ;;  %vm145_vm2 = vcmp.eq.s32.totalorder %v144_v10, %v141_v11 }
  0x9e   : > { %v148_v13 = vpop.permute.xlu0 %147 }
  0x9f   : > { %vm149_vm3 = vcmp.eq.s32.totalorder %v148_v13, %v141_v11 }
  0xa0   : > { %vm150_vm4 = vmor %vm145_vm2, %vm149_vm3 }
  0xa1   : > { %vm155_vm6 = vmor %vm150_vm4, %vm154_vm1 }
  0xa2   : > { %v315_v14 = vsel %vm155_vm6, 1.0, %v452_v8 }
  0xa3   : > { %329 = vmatmul.mubr.msk.f32.vlgmr.msra.gmra.mrb[0].mxu0 %vm160_vm5, %v315_v14 }
 0x176   : > { %v230_v15 = vpop.f32.mrb[0].mxu0 }
 0x177   : > { %235 = vst.msk [vmem:[%s134_s5] sm:$0xff] %vm234_vm7, %v230_v15  ;;  %v330_v16 = vpop.f32.mrb[1].mxu0 }
 0x178   : > { %396 = shalt.err (!%p393_p3)
}
 0x179   : > { %s397_s23 = scalar_lea.hbm %s533_s14, 128  ;;  %s401_s26 = scalar_lea.hbm %s577_s2, 256 }
 0x17a   : > { %p398_p4 = scmp.ne.s32.totalorder %s533_s14, %s397_s23  ;;  %p402_p9 = scmp.lt.u32.totalorder %s533_s14, %s577_s2 }
 0x17b   : > { %p403_p10 = scmp.lt.u32.totalorder %s401_s26, %s397_s23  ;;  %p405_p12 = scmp.lt.u32.totalorder %s397_s23, %s533_s14 }
 0x17c   : > { %p399_p7 = pnand %p398_p4, %p507_p5 }
 0x17d   : > { %p404_p11 = por %p403_p10, %p402_p9 }
 0x17e   : > { %p400_p8 = pneg %p399_p7 }
 0x17f   : > { %p406_p13 = por %p405_p12, %p404_p11 }
 0x181   : > { %p407_p0 = pnand %p406_p13, %p400_p8 }
 0x183   : > { %410 = shalt.err (!%p407_p0)
}
 0x184   : > { %334 = dma.vmem_to_hbm [thread:$0]  (%p507_p5), %s535_s6, 128, %s533_s14, %s237_s16  }
 0x185 PF: > { %p340_p1 = scmp.ge.s32.totalorder %s445_s12, 2  ;;  %s262_s29 = sand.u32 1, %s433_s9  }
 0x186   : > { %s263_s30 = scalar_lea.sflag [#allocation3], %s262_s29 }
 0x187   : > { %p337_p2 = pnand %p340_p1, %p511_p6 }
 0x189   : > { %428 = dma.done.wait (!%p337_p2), %s263_s30, 128  }
 0x18a   : > { %430 = vsyncadd (!%p337_p2), %s263_s30, 4294967168  ;;  %p12_p3 = scmp.ge.s32.totalorder %s494_s15, 4   ;;  %s580_s9 = smov %s437_s10 }
 0x18b   : > { %s581_s10 = smov %s441_s11  ;;  %s582_s11 = smov %s505_s18 }
 0x18c   : > { %s583_s12 = smov %s494_s15  ;;  %14 = sbr.rel (!%p12_p3) target bundleno = 3 (0x3), region = 63 }
 0x193   :  { %268 = vsyncpa [#allocation3], 1 }
 0x194   :  { %270 = vsyncpa [#allocation3 + $0x1], 1 }

</bundles_post_ra>
